<compile_context>
chip_gen: v5e
topology: v5e:2x2
jax: 0.10.0
libtpu: 0.0.40
codegen_flags: <defaults>
</compile_context>

<pallas_src>
import functools

import jax
import jax.numpy as jnp
from jax import lax
from jax.experimental import pallas as pl
from jax.experimental.pallas import tpu as pltpu


def rnn_net_kernel(x2d_ref, wih_t_ref, whh_t_ref, b_ref, wo_t_ref, bo_ref,
                   out_ref, xw_ref, h_all_ref, *, seq_len, batch):
    # x2d_ref:  (T*B, F)   input, time-major flattened
    # wih_t:    (F, H)     W_ih pre-transposed
    # whh_t:    (H, H)     W_hh pre-transposed
    # b:        (1, H)     b_ih + b_hh (fused)
    # wo_t:     (H, C)     W_o pre-transposed
    # bo:       (1, C)
    # out_ref:  (T*B, C)   log-probabilities, flattened (reshaped in wrapper)
    # xw_ref:   (T*B, H)   VMEM scratch: precomputed input projection
    # h_all_ref:(T*B, H)   VMEM scratch: per-step hidden states

    # --- hoist all invariant reads (single vld each, no per-step re-loads) ---
    wih = wih_t_ref[...]
    whh = whh_t_ref[...]
    b = b_ref[...]
    wo = wo_t_ref[...]
    bo = bo_ref[...]

    # --- batched input projection for ALL timesteps (one MXU matmul) --------
    # xw[t*B:(t+1)*B] == x_t @ W_ih^T + (b_ih + b_hh); staged in VMEM scratch
    # so the recurrence reads per-step slices via the ref (cheap offset vld)
    # instead of sublane-extracting from a live value.
    xw_ref[...] = jnp.dot(x2d_ref[...], wih,
                          preferred_element_type=jnp.float32) + b

    H = whh.shape[0]

    # --- serial recurrence: only h_prev @ W_hh^T + precomputed term ---------
    # hidden state carried as a value (fits in a vreg); loop fully unrolled.
    # TODO(synk): hold W_hh resident in the MXU across the unrolled steps via
    # pltpu.matmul_push_rhs / matmul_acc_lhs / matmul_pop to shorten the serial
    # critical path; kept as jnp.dot here for portability at H=32.
    h = jnp.zeros((batch, H), jnp.float32)
    for t in range(seq_len):
        lo = t * batch
        pre = xw_ref[lo:lo + batch, :] + jnp.dot(
            h, whh, preferred_element_type=jnp.float32)
        h = jnp.maximum(pre, 0.0)          # relu nonlinearity
        # per-step store -> otherwise-idle vst slot, overlaps next MXU dot
        h_all_ref[lo:lo + batch, :] = h

    # --- batched epilogue: one output matmul + vectorized log_softmax -------
    logits = jnp.dot(h_all_ref[...], wo,
                     preferred_element_type=jnp.float32) + bo
    m = jnp.max(logits, axis=-1, keepdims=True)
    z = logits - m
    lse = jnp.log(jnp.sum(jnp.exp(z), axis=-1, keepdims=True))
    # single lane-dense bulk store (no per-timestep masked stores)
    out_ref[...] = (z - lse).astype(out_ref.dtype)


def prepare_params(params):
    """One-time layout prep: transposes, bias fusion, casts.

    Called once at param-init time so the per-call forward pass contains no
    transpose/add/reshape/cast HLO ops (they would dominate wall time at
    T*B=16, H=32 where the pallas_call itself is ~1-2 us).
    """
    H = params["w_hh"].shape[0]
    C = params["w_o"].shape[0]
    return {
        "wih_t": jnp.asarray(params["w_ih"].T, jnp.float32),              # (F, H)
        "whh_t": jnp.asarray(params["w_hh"].T, jnp.float32),              # (H, H)
        "b": (params["b_ih"] + params["b_hh"]).reshape(1, H)
            .astype(jnp.float32),                                          # (1, H)
        "wo_t": jnp.asarray(params["w_o"].T, jnp.float32),                # (H, C)
        "bo": params["b_o"].reshape(1, C).astype(jnp.float32),            # (1, C)
    }


def net_forward(x, prepared):
    """x: (T, B, F) float32 -> (T, B, C) float32 log-probabilities.

    `prepared` must come from `prepare_params` (pre-transposed / fused).
    """
    T, B, F = x.shape
    H = prepared["whh_t"].shape[0]
    C = prepared["wo_t"].shape[1]

    x2d = x.reshape(T * B, F)                                             # (T*B, F)

    kernel = functools.partial(rnn_net_kernel, seq_len=T, batch=B)

    out2d = pl.pallas_call(
        kernel,
        out_shape=jax.ShapeDtypeStruct((T * B, C), jnp.float32),
        in_specs=[pl.BlockSpec(memory_space=pltpu.MemorySpace.VMEM)] * 6,
        out_specs=pl.BlockSpec(memory_space=pltpu.MemorySpace.VMEM),
        scratch_shapes=[pltpu.VMEM((T * B, H), jnp.float32),   # xw staging
                        pltpu.VMEM((T * B, H), jnp.float32)],  # h_all
    )(x2d, prepared["wih_t"], prepared["whh_t"], prepared["b"],
      prepared["wo_t"], prepared["bo"])

    # TODO(synk): for long sequences / large batch, tile T*B rows via a grid
    # BlockSpec with dimension_semantics=("parallel",) (v7x: 2 TCs, 64 MiB
    # VMEM budget -> pick row tiles that keep x/out double-buffers resident),
    # and feed bf16 operands to the prologue/epilogue matmuls.
    return out2d.reshape(T, B, C)


def init_params(key, n_features, hidden_size, n_classes):
    """Deterministic init mimicking PyTorch's U(-1/sqrt(H), 1/sqrt(H))."""
    k_rnn = 1.0 / jnp.sqrt(hidden_size)
    k_lin = 1.0 / jnp.sqrt(hidden_size)
    keys = jax.random.split(key, 6)
    return {
        "w_ih": jax.random.uniform(keys[0], (hidden_size, n_features),
                                   jnp.float32, -k_rnn, k_rnn),
        "w_hh": jax.random.uniform(keys[1], (hidden_size, hidden_size),
                                   jnp.float32, -k_rnn, k_rnn),
        "b_ih": jax.random.uniform(keys[2], (hidden_size,),
                                   jnp.float32, -k_rnn, k_rnn),
        "b_hh": jax.random.uniform(keys[3], (hidden_size,),
                                   jnp.float32, -k_rnn, k_rnn),
        "w_o": jax.random.uniform(keys[4], (n_classes, hidden_size),
                                  jnp.float32, -k_lin, k_lin),
        "b_o": jax.random.uniform(keys[5], (n_classes,),
                                  jnp.float32, -k_lin, k_lin),
    }


def reference_forward(x, params):
    """Pure-JAX reference of the PyTorch forward pass (for sanity check)."""
    def step(h, x_t):
        h_new = jax.nn.relu(x_t @ params["w_ih"].T + params["b_ih"]
                            + h @ params["w_hh"].T + params["b_hh"])
        return h_new, h_new
    h0 = jnp.zeros((x.shape[1], params["w_hh"].shape[0]), jnp.float32)
    _, outs = lax.scan(step, h0, x)                     # (T, B, H)
    logits = outs @ params["w_o"].T + params["b_o"]     # (T, B, C)
    return jax.nn.log_softmax(logits, axis=-1)


if __name__ == "__main__":
    n_classes = 2
    n_features = 8
    hidden_size = 32
    seq_len = 8
    batch = 2

    key = jax.random.PRNGKey(0)
    k_params, k_x = jax.random.split(key)
    params = init_params(k_params, n_features, hidden_size, n_classes)
    prepared = prepare_params(params)        # one-time layout prep (review #1)
    x = jax.random.normal(k_x, (seq_len, batch, n_features), jnp.float32)

    pred = net_forward(x, prepared)
    pred = jax.block_until_ready(pred)

    ref = reference_forward(x, params)
    assert pred.shape == (seq_len, batch, n_classes)
    assert jnp.allclose(pred, ref, atol=1e-5, rtol=1e-5)

    print("KERNEL_OK")
</pallas_src>

<mosaic_0001>
module attributes {stable_mosaic.version = 11 : i64} {
  func.func @rnn_net_kernel(%arg0: memref<16x8xf32, #tpu.memory_space<vmem>>, %arg1: memref<8x32xf32, #tpu.memory_space<vmem>>, %arg2: memref<32x32xf32, #tpu.memory_space<vmem>>, %arg3: memref<1x32xf32, #tpu.memory_space<vmem>>, %arg4: memref<32x2xf32, #tpu.memory_space<vmem>>, %arg5: memref<1x2xf32, #tpu.memory_space<vmem>>, %arg6: memref<16x2xf32, #tpu.memory_space<vmem>>, %arg7: memref<16x32xf32, #tpu.memory_space<vmem>>, %arg8: memref<16x32xf32, #tpu.memory_space<vmem>>) attributes {dimension_semantics = [], scalar_prefetch = 0 : i64, scratch_operands = 2 : i64, tpu.core_type = #tpu.core_type<tc>} {
    %c0 = arith.constant 0 : index
    %c0_0 = arith.constant 0 : index
    %0 = vector.load %arg1[%c0, %c0_0] : memref<8x32xf32, #tpu.memory_space<vmem>>, vector<8x32xf32>
    %c0_1 = arith.constant 0 : index
    %c0_2 = arith.constant 0 : index
    %1 = vector.load %arg2[%c0_1, %c0_2] : memref<32x32xf32, #tpu.memory_space<vmem>>, vector<32x32xf32>
    %c0_3 = arith.constant 0 : index
    %c0_4 = arith.constant 0 : index
    %2 = vector.load %arg3[%c0_3, %c0_4] : memref<1x32xf32, #tpu.memory_space<vmem>>, vector<1x32xf32>
    %c0_5 = arith.constant 0 : index
    %c0_6 = arith.constant 0 : index
    %3 = vector.load %arg4[%c0_5, %c0_6] : memref<32x2xf32, #tpu.memory_space<vmem>>, vector<32x2xf32>
    %c0_7 = arith.constant 0 : index
    %c0_8 = arith.constant 0 : index
    %4 = vector.load %arg5[%c0_7, %c0_8] : memref<1x2xf32, #tpu.memory_space<vmem>>, vector<1x2xf32>
    %c0_9 = arith.constant 0 : index
    %c0_10 = arith.constant 0 : index
    %5 = vector.load %arg0[%c0_9, %c0_10] : memref<16x8xf32, #tpu.memory_space<vmem>>, vector<16x8xf32>
    %cst = arith.constant dense<0.000000e+00> : vector<16x32xf32>
    %6 = tpu.matmul %5, %0, %cst {dimension_numbers = #tpu.dot_dimension_numbers<[1], [0], [0], [1], [0, 0, 1, 1], [], []>} : vector<16x8xf32>, vector<8x32xf32>, vector<16x32xf32> -> vector<16x32xf32>
    %7 = vector.broadcast %2 : vector<1x32xf32> to vector<16x32xf32>
    %8 = arith.addf %6, %7 : vector<16x32xf32>
    %c0_11 = arith.constant 0 : index
    %c0_12 = arith.constant 0 : index
    %9 = vector.load %arg7[%c0_11, %c0_12] : memref<16x32xf32, #tpu.memory_space<vmem>>, vector<16x32xf32>
    tpu.vector_store %arg7[%c0_11, %c0_12], %8 {strides = array<i32>} : memref<16x32xf32, #tpu.memory_space<vmem>>, vector<16x32xf32>,
    %cst_13 = arith.constant 0.000000e+00 : f32
    %10 = vector.broadcast %cst_13 : f32 to vector<2x32xf32>
    %c0_14 = arith.constant 0 : index
    %c0_15 = arith.constant 0 : index
    %11 = vector.load %arg7[%c0_14, %c0_15] : memref<16x32xf32, #tpu.memory_space<vmem>>, vector<2x32xf32>
    %cst_16 = arith.constant dense<0.000000e+00> : vector<2x32xf32>
    %12 = tpu.matmul %10, %1, %cst_16 {dimension_numbers = #tpu.dot_dimension_numbers<[1], [0], [0], [1], [0, 0, 1, 1], [], []>} : vector<2x32xf32>, vector<32x32xf32>, vector<2x32xf32> -> vector<2x32xf32>
    %13 = arith.addf %11, %12 : vector<2x32xf32>
    %cst_17 = arith.constant 0.000000e+00 : f32
    %14 = vector.broadcast %cst_17 : f32 to vector<2x32xf32>
    %15 = arith.maximumf %13, %14 : vector<2x32xf32>
    %c0_18 = arith.constant 0 : index
    %c0_19 = arith.constant 0 : index
    %16 = vector.load %arg8[%c0_18, %c0_19] : memref<16x32xf32, #tpu.memory_space<vmem>>, vector<2x32xf32>
    tpu.vector_store %arg8[%c0_18, %c0_19], %15 {strides = array<i32>} : memref<16x32xf32, #tpu.memory_space<vmem>>, vector<2x32xf32>,
    %c2 = arith.constant 2 : index
    %c0_20 = arith.constant 0 : index
    %17 = vector.load %arg7[%c2, %c0_20] : memref<16x32xf32, #tpu.memory_space<vmem>>, vector<2x32xf32>
    %cst_21 = arith.constant dense<0.000000e+00> : vector<2x32xf32>
    %18 = tpu.matmul %15, %1, %cst_21 {dimension_numbers = #tpu.dot_dimension_numbers<[1], [0], [0], [1], [0, 0, 1, 1], [], []>} : vector<2x32xf32>, vector<32x32xf32>, vector<2x32xf32> -> vector<2x32xf32>
    %19 = arith.addf %17, %18 : vector<2x32xf32>
    %cst_22 = arith.constant 0.000000e+00 : f32
    %20 = vector.broadcast %cst_22 : f32 to vector<2x32xf32>
    %21 = arith.maximumf %19, %20 : vector<2x32xf32>
    %c2_23 = arith.constant 2 : index
    %c0_24 = arith.constant 0 : index
    %22 = vector.load %arg8[%c2_23, %c0_24] : memref<16x32xf32, #tpu.memory_space<vmem>>, vector<2x32xf32>
    tpu.vector_store %arg8[%c2_23, %c0_24], %21 {strides = array<i32>} : memref<16x32xf32, #tpu.memory_space<vmem>>, vector<2x32xf32>,
    %c4 = arith.constant 4 : index
    %c0_25 = arith.constant 0 : index
    %23 = vector.load %arg7[%c4, %c0_25] : memref<16x32xf32, #tpu.memory_space<vmem>>, vector<2x32xf32>
    %cst_26 = arith.constant dense<0.000000e+00> : vector<2x32xf32>
    %24 = tpu.matmul %21, %1, %cst_26 {dimension_numbers = #tpu.dot_dimension_numbers<[1], [0], [0], [1], [0, 0, 1, 1], [], []>} : vector<2x32xf32>, vector<32x32xf32>, vector<2x32xf32> -> vector<2x32xf32>
    %25 = arith.addf %23, %24 : vector<2x32xf32>
    %cst_27 = arith.constant 0.000000e+00 : f32
    %26 = vector.broadcast %cst_27 : f32 to vector<2x32xf32>
    %27 = arith.maximumf %25, %26 : vector<2x32xf32>
    %c4_28 = arith.constant 4 : index
    %c0_29 = arith.constant 0 : index
    %28 = vector.load %arg8[%c4_28, %c0_29] : memref<16x32xf32, #tpu.memory_space<vmem>>, vector<2x32xf32>
    tpu.vector_store %arg8[%c4_28, %c0_29], %27 {strides = array<i32>} : memref<16x32xf32, #tpu.memory_space<vmem>>, vector<2x32xf32>,
    %c6 = arith.constant 6 : index
    %c0_30 = arith.constant 0 : index
    %29 = vector.load %arg7[%c6, %c0_30] : memref<16x32xf32, #tpu.memory_space<vmem>>, vector<2x32xf32>
    %cst_31 = arith.constant dense<0.000000e+00> : vector<2x32xf32>
    %30 = tpu.matmul %27, %1, %cst_31 {dimension_numbers = #tpu.dot_dimension_numbers<[1], [0], [0], [1], [0, 0, 1, 1], [], []>} : vector<2x32xf32>, vector<32x32xf32>, vector<2x32xf32> -> vector<2x32xf32>
    %31 = arith.addf %29, %30 : vector<2x32xf32>
    %cst_32 = arith.constant 0.000000e+00 : f32
    %32 = vector.broadcast %cst_32 : f32 to vector<2x32xf32>
    %33 = arith.maximumf %31, %32 : vector<2x32xf32>
    %c6_33 = arith.constant 6 : index
    %c0_34 = arith.constant 0 : index
    %34 = vector.load %arg8[%c6_33, %c0_34] : memref<16x32xf32, #tpu.memory_space<vmem>>, vector<2x32xf32>
    tpu.vector_store %arg8[%c6_33, %c0_34], %33 {strides = array<i32>} : memref<16x32xf32, #tpu.memory_space<vmem>>, vector<2x32xf32>,
    %c8 = arith.constant 8 : index
    %c0_35 = arith.constant 0 : index
    %35 = vector.load %arg7[%c8, %c0_35] : memref<16x32xf32, #tpu.memory_space<vmem>>, vector<2x32xf32>
    %cst_36 = arith.constant dense<0.000000e+00> : vector<2x32xf32>
    %36 = tpu.matmul %33, %1, %cst_36 {dimension_numbers = #tpu.dot_dimension_numbers<[1], [0], [0], [1], [0, 0, 1, 1], [], []>} : vector<2x32xf32>, vector<32x32xf32>, vector<2x32xf32> -> vector<2x32xf32>
    %37 = arith.addf %35, %36 : vector<2x32xf32>
    %cst_37 = arith.constant 0.000000e+00 : f32
    %38 = vector.broadcast %cst_37 : f32 to vector<2x32xf32>
    %39 = arith.maximumf %37, %38 : vector<2x32xf32>
    %c8_38 = arith.constant 8 : index
    %c0_39 = arith.constant 0 : index
    %40 = vector.load %arg8[%c8_38, %c0_39] : memref<16x32xf32, #tpu.memory_space<vmem>>, vector<2x32xf32>
    tpu.vector_store %arg8[%c8_38, %c0_39], %39 {strides = array<i32>} : memref<16x32xf32, #tpu.memory_space<vmem>>, vector<2x32xf32>,
    %c10 = arith.constant 10 : index
    %c0_40 = arith.constant 0 : index
    %41 = vector.load %arg7[%c10, %c0_40] : memref<16x32xf32, #tpu.memory_space<vmem>>, vector<2x32xf32>
    %cst_41 = arith.constant dense<0.000000e+00> : vector<2x32xf32>
    %42 = tpu.matmul %39, %1, %cst_41 {dimension_numbers = #tpu.dot_dimension_numbers<[1], [0], [0], [1], [0, 0, 1, 1], [], []>} : vector<2x32xf32>, vector<32x32xf32>, vector<2x32xf32> -> vector<2x32xf32>
    %43 = arith.addf %41, %42 : vector<2x32xf32>
    %cst_42 = arith.constant 0.000000e+00 : f32
    %44 = vector.broadcast %cst_42 : f32 to vector<2x32xf32>
    %45 = arith.maximumf %43, %44 : vector<2x32xf32>
    %c10_43 = arith.constant 10 : index
    %c0_44 = arith.constant 0 : index
    %46 = vector.load %arg8[%c10_43, %c0_44] : memref<16x32xf32, #tpu.memory_space<vmem>>, vector<2x32xf32>
    tpu.vector_store %arg8[%c10_43, %c0_44], %45 {strides = array<i32>} : memref<16x32xf32, #tpu.memory_space<vmem>>, vector<2x32xf32>,
    %c12 = arith.constant 12 : index
    %c0_45 = arith.constant 0 : index
    %47 = vector.load %arg7[%c12, %c0_45] : memref<16x32xf32, #tpu.memory_space<vmem>>, vector<2x32xf32>
    %cst_46 = arith.constant dense<0.000000e+00> : vector<2x32xf32>
    %48 = tpu.matmul %45, %1, %cst_46 {dimension_numbers = #tpu.dot_dimension_numbers<[1], [0], [0], [1], [0, 0, 1, 1], [], []>} : vector<2x32xf32>, vector<32x32xf32>, vector<2x32xf32> -> vector<2x32xf32>
    %49 = arith.addf %47, %48 : vector<2x32xf32>
    %cst_47 = arith.constant 0.000000e+00 : f32
    %50 = vector.broadcast %cst_47 : f32 to vector<2x32xf32>
    %51 = arith.maximumf %49, %50 : vector<2x32xf32>
    %c12_48 = arith.constant 12 : index
    %c0_49 = arith.constant 0 : index
    %52 = vector.load %arg8[%c12_48, %c0_49] : memref<16x32xf32, #tpu.memory_space<vmem>>, vector<2x32xf32>
    tpu.vector_store %arg8[%c12_48, %c0_49], %51 {strides = array<i32>} : memref<16x32xf32, #tpu.memory_space<vmem>>, vector<2x32xf32>,
    %c14 = arith.constant 14 : index
    %c0_50 = arith.constant 0 : index
    %53 = vector.load %arg7[%c14, %c0_50] : memref<16x32xf32, #tpu.memory_space<vmem>>, vector<2x32xf32>
    %cst_51 = arith.constant dense<0.000000e+00> : vector<2x32xf32>
    %54 = tpu.matmul %51, %1, %cst_51 {dimension_numbers = #tpu.dot_dimension_numbers<[1], [0], [0], [1], [0, 0, 1, 1], [], []>} : vector<2x32xf32>, vector<32x32xf32>, vector<2x32xf32> -> vector<2x32xf32>
    %55 = arith.addf %53, %54 : vector<2x32xf32>
    %cst_52 = arith.constant 0.000000e+00 : f32
    %56 = vector.broadcast %cst_52 : f32 to vector<2x32xf32>
    %57 = arith.maximumf %55, %56 : vector<2x32xf32>
    %c14_53 = arith.constant 14 : index
    %c0_54 = arith.constant 0 : index
    %58 = vector.load %arg8[%c14_53, %c0_54] : memref<16x32xf32, #tpu.memory_space<vmem>>, vector<2x32xf32>
    tpu.vector_store %arg8[%c14_53, %c0_54], %57 {strides = array<i32>} : memref<16x32xf32, #tpu.memory_space<vmem>>, vector<2x32xf32>,
    %c0_55 = arith.constant 0 : index
    %c0_56 = arith.constant 0 : index
    %59 = vector.load %arg8[%c0_55, %c0_56] : memref<16x32xf32, #tpu.memory_space<vmem>>, vector<16x32xf32>
    %cst_57 = arith.constant dense<0.000000e+00> : vector<16x2xf32>
    %60 = tpu.matmul %59, %3, %cst_57 {dimension_numbers = #tpu.dot_dimension_numbers<[1], [0], [0], [1], [0, 0, 1, 1], [], []>} : vector<16x32xf32>, vector<32x2xf32>, vector<16x2xf32> -> vector<16x2xf32>
    %61 = vector.broadcast %4 : vector<1x2xf32> to vector<16x2xf32>
    %62 = arith.addf %60, %61 : vector<16x2xf32>
    %cst_58 = arith.constant dense<0xFF800000> : vector<16xf32>
    %63 = vector.multi_reduction <maximumf>, %62, %cst_58 [1] : vector<16x2xf32> to vector<16xf32>
    %64 = vector.shape_cast %63 : vector<16xf32> to vector<16x1xf32>
    %65 = vector.broadcast %64 : vector<16x1xf32> to vector<16x2xf32>
    %66 = arith.subf %62, %65 : vector<16x2xf32>
    %67 = math.exp %66 : vector<16x2xf32>
    %cst_59 = arith.constant dense<0.000000e+00> : vector<16xf32>
    %68 = vector.multi_reduction <add>, %67, %cst_59 [1] : vector<16x2xf32> to vector<16xf32>
    %69 = vector.shape_cast %68 : vector<16xf32> to vector<16x1xf32>
    %70 = math.log %69 : vector<16x1xf32>
    %71 = vector.broadcast %70 : vector<16x1xf32> to vector<16x2xf32>
    %72 = arith.subf %66, %71 : vector<16x2xf32>
    %c0_60 = arith.constant 0 : index
    %c0_61 = arith.constant 0 : index
    %73 = vector.load %arg6[%c0_60, %c0_61] : memref<16x2xf32, #tpu.memory_space<vmem>>, vector<16x2xf32>
    tpu.vector_store %arg6[%c0_60, %c0_61], %72 {strides = array<i32>} : memref<16x2xf32, #tpu.memory_space<vmem>>, vector<16x2xf32>,
    return
  }
}

</mosaic_0001>

<bundles_post_ra>
// kernel: tpu_custom_call.1
= control target key start
LH: loop header
LB: loop body
LE: loop exit
PB: predicated region body
PF: predicated region fallthrough
CT: control target
= control target key end

     0   :  { %vm39_vm0 = vcmask 64512   ;;  %v376_v6 = vmov 0.0   ;;  %vm69_vm1 = vcmask 261120   ;;  %vm98_vm2 = vcmask 254976   ;;  %s484_s1 = inlined_call_operand.vmem [shape: f32[8,32], index: 1, kind: input, shape index: {}]   ;;  %s485_s0 = inlined_call_operand.vmem [shape: f32[16,8], index: 0, kind: input, shape index: {}]   ;;  %s486_s2 = inlined_call_operand.vmem [shape: f32[32,32], index: 2, kind: input, shape index: {}]   ;;  %s487_s3 = inlined_call_operand.vmem [shape: f32[1,32], index: 3, kind: input, shape index: {}]   ;;  %s488_s4 = inlined_call_operand.vmem [shape: f32[32,2], index: 4, kind: input, shape index: {}]   ;;  %s489_s5 = inlined_call_operand.vmem [shape: f32[1,2], index: 5, kind: input, shape index: {}]   ;;  %s490_s6 = inlined_call_operand.vmem [shape: f32[16,2], index: 6, kind: output, shape index: {}]  }
   0x1   :  { %v23_v0 = vld [vmem:[%s484_s1] sm:$0xff]  ;;  %v27_v2 = vld [vmem:[%s486_s2 + $0x18] sm:$0xff]  ;;  %v26_v3 = vld [vmem:[%s486_s2 + $0x10] sm:$0xff]  ;;  %vm323_vm3 = vcmask 15360  }
   0x2   :  { %v34_v1 = vld [vmem:[%s485_s0] sm:$0xff]  ;;  %61 = vmatpush.msra.mxu0 %v23_v0  ;;  %88 = vmatpush.msra.mxu1 %v27_v2  ;;  %v25_v4 = vld [vmem:[%s486_s2 + $0x8] sm:$0xff]  ;;  %v32_v23 = vld [vmem:[%s488_s4 + $0x18] sm:$0xff] }
   0x3   :  { %354 = vmatmul.msk.f32.vlgmr.msra.gmra.mxu0 %vm39_vm0, %v34_v1  ;;  %116 = vmatpush.msra.mxu3 %v27_v2  ;;  %v24_v5 = vld [vmem:[%s486_s2] sm:$0xff]  ;;  %v35_v22 = vld [vmem:[%s485_s0 + $0x8] sm:$0xff]  ;;  %v31_v24 = vld [vmem:[%s488_s4 + $0x10] sm:$0xff] }
   0x4   :  { %89 = vmatpush.msra.mxu1 %v26_v3  ;;  %197 = vmatpush.msra.mxu2 %v27_v2  ;;  %v366_v7 = vld [vmem:[%s487_s3] ss:$0 sm:$0xff]  ;;  %v30_v25 = vld [vmem:[%s488_s4 + $0x8] sm:$0xff] }
   0x5   :  { %117 = vmatpush.msra.mxu3 %v26_v3  ;;  %251 = vmatpush.msrb.mxu0 %v27_v2  ;;  %v29_v26 = vld [vmem:[%s488_s4] sm:$0xff] }
   0x6   :  { %90 = vmatpush.msra.mxu1 %v25_v4  ;;  %198 = vmatpush.msra.mxu2 %v26_v3  ;;  %v367_v38 = vld [vmem:[%s489_s5] ss:$0 sm:$0xff] }
   0x7   :  { %118 = vmatpush.msra.mxu3 %v25_v4  ;;  %252 = vmatpush.msrb.mxu0 %v26_v3 }
   0x8   :  { %91 = vmatpush.msra.mxu1 %v24_v5  ;;  %199 = vmatpush.msra.mxu2 %v25_v4 }
   0x9   :  { %92 = vmatmul.f32.vlgmr.msra.gmra.mxu1 %v376_v6  ;;  %119 = vmatpush.msra.mxu3 %v24_v5 }
   0xa   :  { %170 = vmatpush.msrb.mxu1 %v27_v2  ;;  %200 = vmatpush.msra.mxu2 %v24_v5 }
   0xb   :  { %143 = vmatpush.msrb.mxu3 %v27_v2  ;;  %253 = vmatpush.msrb.mxu0 %v25_v4 }
   0xc   :  { %171 = vmatpush.msrb.mxu1 %v26_v3  ;;  %355 = vmatmul.msk.f32.gmra.mxu0 %vm39_vm0, %v35_v22 }
   0xd   :  { %144 = vmatpush.msrb.mxu3 %v26_v3  ;;  %254 = vmatpush.msrb.mxu0 %v24_v5 }
   0xe   :  { %172 = vmatpush.msrb.mxu1 %v25_v4  ;;  %312 = vmatpush.msrb.mxu2 %v32_v23 }
   0xf   :  { %145 = vmatpush.msrb.mxu3 %v25_v4 }
  0x10   :  { %173 = vmatpush.msrb.mxu1 %v24_v5  ;;  %313 = vmatpush.msrb.mxu2 %v31_v24 }
  0x11   :  { %146 = vmatpush.msrb.mxu3 %v24_v5 }
  0x12   :  { %278 = vmatpush.msra.mxu1 %v27_v2  ;;  %314 = vmatpush.msrb.mxu2 %v30_v25 }
  0x14   :  { %279 = vmatpush.msra.mxu1 %v26_v3  ;;  %315 = vmatpush.msrb.mxu2 %v29_v26 }
  0x16   :  { %280 = vmatpush.msra.mxu1 %v25_v4 }
  0x18   :  { %281 = vmatpush.msra.mxu1 %v24_v5 }
  0x80   :  { %v63_v8 = vpop.f32.mrf.mxu0 }
  0x81   :  { %v64_v9 = vadd.f32 %v366_v7, %v63_v8 }
  0x83   :  { %70 = vst.msk [vmem:[#allocation2] sm:$0xff] %vm69_vm1, %v64_v9 }
  0x86   :  { %v93_v10 = vpop.f32.mrf.mxu1 }
  0x89   :  { %v66_v32 = vpop.f32.mrf.mxu0 }
  0x8a   :  { %v72_v11 = vld [vmem:[#allocation2] sm:$0x3]  ;;  %v100_v14 = vld [vmem:[#allocation2 + $0x2] sm:$0x3]  ;;  %v127_v18 = vld [vmem:[#allocation2 + $0x4] sm:$0x3]  ;;  %v67_v33 = vadd.f32 %v366_v7, %v66_v32 }
  0x8b   :  { %v96_v12 = vadd.f32 %v93_v10, %v72_v11  ;;  %v154_v27 = vld [vmem:[#allocation2 + $0x6] sm:$0x3] }
  0x8c   :  { %71 = vst.msk [vmem:[#allocation2 + $0x8] sm:$0xff] %vm69_vm1, %v67_v33 }
  0x8d   :  { %v97_v13 = vmax.f32 %v96_v12, 0.0 }
  0x8f   :  { %99 = vst.msk [vmem:[#allocation3] sm:$0x3] %vm98_vm2, %v97_v13  ;;  %356 = vmatmul.msk.f32.vlgmr.msra.gmra.mxu3 %vm69_vm1, %v97_v13 }
  0x90   :  { %224 = vmatpush.msra.mxu3 %v27_v2 }
  0x92   :  { %225 = vmatpush.msra.mxu3 %v26_v3 }
  0x93   :  { %v181_v34 = vld [vmem:[#allocation2 + $0x8] sm:$0x3]  ;;  %v208_v45 = vld [vmem:[#allocation2 + $0xa] sm:$0x3]  ;;  %v235_v55 = vld [vmem:[#allocation2 + $0xc] sm:$0x3] }
  0x94   :  { %226 = vmatpush.msra.mxu3 %v25_v4  ;;  %v262_v59 = vld [vmem:[#allocation2 + $0xe] sm:$0x3] }
  0x96   :  { %227 = vmatpush.msra.mxu3 %v24_v5 }
 0x112   :  { %v121_v15 = vpop.f32.mrf.mxu3 }
 0x113   :  { %v124_v16 = vadd.f32 %v121_v15, %v100_v14 }
 0x115   :  { %v125_v17 = vmax.f32 %v124_v16, 0.0 }
 0x117   :  { %126 = vst.msk [vmem:[#allocation3 + $0x2] sm:$0x3] %vm98_vm2, %v125_v17  ;;  %357 = vmatmul.msk.f32.vlgmr.msrb.gmra.mxu3 %vm69_vm1, %v125_v17 }
 0x19a   :  { %v148_v19 = vpop.f32.mrf.mxu3 }
 0x19b   :  { %v151_v20 = vadd.f32 %v148_v19, %v127_v18 }
 0x19d   :  { %v152_v21 = vmax.f32 %v151_v20, 0.0 }
 0x19f   :  { %153 = vst.msk [vmem:[#allocation3 + $0x4] sm:$0x3] %vm98_vm2, %v152_v21  ;;  %358 = vmatmul.msk.f32.vlgmr.msrb.gmra.mxu1 %vm69_vm1, %v152_v21 }
 0x21c   :  { %v175_v28 = vpop.f32.mrf.mxu1 }
 0x21d   :  { %v178_v29 = vadd.f32 %v175_v28, %v154_v27 }
 0x21f   :  { %v179_v30 = vmax.f32 %v178_v29, 0.0 }
 0x221   :  { %180 = vst.msk [vmem:[#allocation3 + $0x6] sm:$0x3] %vm98_vm2, %v179_v30  ;;  %359 = vmatmul.msk.f32.vlgmr.msra.gmra.mxu2 %vm69_vm1, %v179_v30 }
 0x228   :  { %v289_v31 = vld [vmem:[#allocation3] sm:$0xff] }
 0x229   :  { %363 = vmatmul.msk.f32.vlgmr.msrb.gmra.mxu2 %vm69_vm1, %v289_v31 }
 0x2a4   :  { %v202_v35 = vpop.f32.mrf.mxu2 }
 0x2a5   :  { %v205_v36 = vadd.f32 %v202_v35, %v181_v34 }
 0x2a7   :  { %v206_v37 = vmax.f32 %v205_v36, 0.0 }
 0x2a9   :  { %207 = vst.msk [vmem:[#allocation3 + $0x8] sm:$0x3] %vm98_vm2, %v206_v37  ;;  %360 = vmatmul.msk.f32.vlgmr.msra.gmra.mxu3 %vm69_vm1, %v206_v37 }
 0x2ac   :  { %v317_v39 = vpop.f32.mrf.mxu2 }
 0x2ad   :  { %v318_v40 = vadd.f32 %v367_v38, %v317_v39 }
 0x2af   :  { %v324_v41 = vsel %vm323_vm3, %v318_v40, -inf }
 0x2b0   :  { %325 = vmax.xlane.f32.xlu0 %v324_v41 }
 0x323   :  { %v326_v42 = vpop.xlane.xlu0 %325 }
 0x324   :  { %v330_v43 = vsub.f32 %v318_v40, %v326_v42 }
 0x326   :  { %v332_v44 = vmul.f32 1.442695, %v330_v43 }
 0x328   :  { %368 = vpow2.f32 %v332_v44 }
 0x32c   :  { %v229_v46 = vpop.f32.mrf.mxu3 }
 0x32d   :  { %v232_v47 = vadd.f32 %v229_v46, %v208_v45 }
 0x32e   :  { %v369_v48 = vpop.eup %368 }
 0x32f   :  { %v233_v49 = vmax.f32 %v232_v47, 0.0  ;;  %v336_v50 = vsel %vm323_vm3, %v369_v48, 0.0 }
 0x330   :  { %337 = vadd.xlane.f32.xlu1 %v336_v50 }
 0x331   :  { %234 = vst.msk [vmem:[#allocation3 + $0xa] sm:$0x3] %vm98_vm2, %v233_v49  ;;  %361 = vmatmul.msk.f32.vlgmr.msrb.gmra.mxu0 %vm69_vm1, %v233_v49 }
 0x3a3   :  { %v338_v51 = vpop.xlane.xlu1 %337 }
 0x3a4   :  { %370 = vlog2.f32 %v338_v51 }
 0x3aa   :  { %v371_v52 = vpop.eup %370 }
 0x3ab   :  { %v343_v53 = vmul.f32 0.6931472, %v371_v52 }
 0x3ad   :  { %v346_v54 = vsub.f32 %v330_v43, %v343_v53 }
 0x3ae   :  { %v256_v56 = vpop.f32.mrf.mxu0 }
 0x3af   :  { %348 = vst.msk [vmem:[%s490_s6] sm:$0xff] %vm323_vm3, %v346_v54  ;;  %v259_v57 = vadd.f32 %v256_v56, %v235_v55 }
 0x3b1   :  { %v260_v58 = vmax.f32 %v259_v57, 0.0 }
 0x3b3   :  { %261 = vst.msk [vmem:[#allocation3 + $0xc] sm:$0x3] %vm98_vm2, %v260_v58  ;;  %362 = vmatmul.msk.f32.vlgmr.msra.gmra.mxu1 %vm69_vm1, %v260_v58 }
 0x430   :  { %v283_v60 = vpop.f32.mrf.mxu1 }
 0x431   :  { %v286_v61 = vadd.f32 %v283_v60, %v262_v59 }
 0x433   :  { %v287_v62 = vmax.f32 %v286_v61, 0.0 }
 0x435   :  { %288 = vst.msk [vmem:[#allocation3 + $0xe] sm:$0x3] %vm98_vm2, %v287_v62 }
 0x43c   :  { %v290_v63 = vld [vmem:[#allocation3 + $0x8] sm:$0xff] }
 0x43d   :  { %364 = vmatmul.msk.f32.gmra.mxu2 %vm69_vm1, %v290_v63 }
 0x4c0   :  { %v320_v0 = vpop.f32.mrf.mxu2 }
 0x4c1   :  { %v321_v1 = vadd.f32 %v367_v38, %v320_v0 }
 0x4c3   :  { %v327_v2 = vsel %vm323_vm3, %v321_v1, -inf }
 0x4c4   :  { %328 = vmax.xlane.f32.xlu0 %v327_v2 }
 0x537   :  { %v329_v3 = vpop.xlane.xlu0 %328 }
 0x538   :  { %v331_v4 = vsub.f32 %v321_v1, %v329_v3 }
 0x53a   :  { %v334_v5 = vmul.f32 1.442695, %v331_v4 }
 0x53c   :  { %372 = vpow2.f32 %v334_v5 }
 0x542   :  { %v373_v6 = vpop.eup %372 }
 0x543   :  { %v339_v7 = vsel %vm323_vm3, %v373_v6, 0.0 }
 0x544   :  { %340 = vadd.xlane.f32.xlu1 %v339_v7 }
 0x5b7   :  { %v341_v8 = vpop.xlane.xlu1 %340 }
 0x5b8   :  { %374 = vlog2.f32 %v341_v8 }
 0x5be   :  { %v375_v9 = vpop.eup %374 }
 0x5bf   :  { %v345_v10 = vmul.f32 0.6931472, %v375_v9 }
 0x5c1   :  { %v347_v11 = vsub.f32 %v331_v4, %v345_v10 }
 0x5c3   :  { %349 = vst.msk [vmem:[%s490_s6 + $0x8] sm:$0xff] %vm323_vm3, %v347_v11 }

</bundles_post_ra>
